<compile_context>
chip_gen: v7x
topology: tpu7x:2x2x1
jax: 0.10.0
libtpu: 0.0.40
codegen_flags: <defaults>
</compile_context>

<pallas_src>
import numpy as np
import jax
import jax.numpy as jnp
from jax import lax
from jax.experimental import pallas as pl
from jax.experimental.pallas import tpu as pltpu

IN_CH = 4
OUT_CH = 4
EXPAND = 2
HIDDEN = round(IN_CH * EXPAND)      # 8 ; groups = hidden_dim -> depthwise 3x3
NUM_LAYERS = 1
H = W = 16
N = 2
PAD = 128                            # lane-aligned halo per image
PCOLS = IN_CH + 12 + HIDDEN          # packed-parameter slab width (= 24)


def _make_kernel(n_img, h_dim, w_dim, c_in, hidden, c_out, pad):
    hw = h_dim * w_dim
    span = 2 * pad + hw              # per-image region width in the scratch

    def kernel(x_ref, p_ref, o_ref, pad_ref):
        # ---- unpack the single parameter slab (one DMA for all weights) ----
        P = p_ref[...]                                           # (hidden, 24)
        w1 = P[:, 0:c_in]                                        # (hidden, c_in)
        b1 = P[:, c_in:c_in + 1]                                 # (hidden, 1)
        wdw = P[:, c_in + 1:c_in + 10]                           # (hidden, 9)
        bdw = P[:, c_in + 10:c_in + 11]                          # (hidden, 1)
        w3 = P[:c_out, c_in + 11:c_in + 11 + hidden]             # (c_out, hidden)
        b3 = P[:c_out, c_in + 11 + hidden:c_in + 12 + hidden]    # (c_out, 1)

        # ---- in-kernel column masks for the kx = +-1 taps (no mask DMA) ----
        lane = lax.broadcasted_iota(jnp.int32, (hidden, hw), 1)
        if (w_dim & (w_dim - 1)) == 0:
            col = lane & (w_dim - 1)        # W is a power of two here
        else:
            col = lane % w_dim
        not_left = col != 0                 # valid positions for dx = -1 taps
        not_right = col != (w_dim - 1)      # valid positions for dx = +1 taps

        # ---- zero only the halo columns (128-lane aligned, unmasked stores) ----
        halo = jnp.zeros((hidden, pad), jnp.float32)
        for n in range(n_img):
            base = n * span + pad
            pad_ref[:, base - pad:base] = halo
            pad_ref[:, base + hw:base + hw + pad] = halo

        for n in range(n_img):
            base = n * span + pad
            row0 = n * c_in

            # ---- 1x1 expand conv + ReLU: c_in VPU broadcast-FMAs ----
            x_n = x_ref[row0:row0 + c_in, :]                     # (c_in, hw)
            acc = w1[:, 0:1] * x_n[0:1, :]
            for ci in range(1, c_in):
                acc = acc + w1[:, ci:ci + 1] * x_n[ci:ci + 1, :]
            hact = jnp.maximum(acc + b1, 0.0)                    # (hidden, hw)

            # ---- stage plane into its zero-halo region (aligned store) ----
            pad_ref[:, base:base + hw] = hact

            # ---- depthwise 3x3 (stride 1, pad 1): 9 shifted whole-plane FMAs,
            #      grouped by kx; one edge select per group ----
            groups = []
            for kx in range(3):
                dx = kx - 1
                g = None
                for ky in range(3):
                    k = 3 * ky + kx
                    off = base + (ky - 1) * w_dim + dx
                    term = pad_ref[:, off:off + hw] * wdw[:, k:k + 1]
                    g = term if g is None else g + term
                groups.append(g)
            acc = (jnp.where(not_left, groups[0], 0.0)
                   + groups[1]
                   + jnp.where(not_right, groups[2], 0.0))
            aact = jnp.maximum(acc + bdw, 0.0)                   # (hidden, hw)

            # ---- 1x1 projection conv: hidden VPU broadcast-FMAs (K=8 would
            #      leave the MXU almost empty, stay on the VPU) ----
            pacc = w3[:, 0:1] * aact[0:1, :]
            for ch in range(1, hidden):
                pacc = pacc + w3[:, ch:ch + 1] * aact[ch:ch + 1, :]

            # ---- bias + residual add; lane-dense (256-lane) store ----
            o_ref[row0:row0 + c_out, :] = x_n + pacc + b3

    return kernel


def inverted_residual_pallas(x_nchw, param_slab):
    """x_nchw: (N, C_in, H, W) float32. param_slab: packed (HIDDEN, PCOLS)."""
    n, c_in, h_dim, w_dim = x_nchw.shape
    hidden, pcols = param_slab.shape
    c_out = c_in                     # stride=1 residual path: C_out == C_in
    hw = h_dim * w_dim

    # NCHW -> (N*C, H*W): pure reshape of a contiguous array (no transpose).
    x2 = x_nchw.reshape(n * c_in, hw)

    kernel = _make_kernel(n, h_dim, w_dim, c_in, hidden, c_out, PAD)
    out2 = pl.pallas_call(
        kernel,
        out_shape=jax.ShapeDtypeStruct((n * c_out, hw), jnp.float32),
        grid_spec=pltpu.PrefetchScalarGridSpec(
            num_scalar_prefetch=0,
            grid=(1,),               # whole problem (~10 KB of data) in one step
            in_specs=[
                pl.BlockSpec((n * c_in, hw), lambda i: (0, 0)),     # x (view)
                pl.BlockSpec((hidden, pcols), lambda i: (0, 0)),    # packed params
            ],
            out_specs=pl.BlockSpec((n * c_out, hw), lambda i: (0, 0)),
            scratch_shapes=[
                pltpu.VMEM((hidden, n * (2 * PAD + hw)), jnp.float32),
            ],
        ),
        compiler_params=pltpu.CompilerParams(
            dimension_semantics=("arbitrary",)),
    )(x2, param_slab)

    # (N*C, H*W) -> NCHW: again a pure reshape (no transpose).
    return out2.reshape(n, c_out, h_dim, w_dim)


# ---------------- deterministic parameter init (fixup_init style) ------------
def init_params(key):
    k1, k2, k3, kb1, kb2, kb3 = jax.random.split(key, 6)
    # torch weight shapes (OIHW); fixup_init std = sqrt(2/(O*prod(kHW))) * L^-0.25
    std1 = np.sqrt(2.0 / (HIDDEN * 1)) * NUM_LAYERS ** (-0.25)
    std2 = np.sqrt(2.0 / (HIDDEN * 9)) * NUM_LAYERS ** (-0.25)
    std3 = np.sqrt(2.0 / (OUT_CH * 1)) * NUM_LAYERS ** (-0.25)
    w1_oihw = std1 * jax.random.normal(k1, (HIDDEN, IN_CH, 1, 1), jnp.float32)
    wdw_oihw = std2 * jax.random.normal(k2, (HIDDEN, 1, 3, 3), jnp.float32)
    w3_oihw = std3 * jax.random.normal(k3, (OUT_CH, HIDDEN, 1, 1), jnp.float32)
    b1 = 0.1 * jax.random.normal(kb1, (HIDDEN,), jnp.float32)
    bdw = 0.1 * jax.random.normal(kb2, (HIDDEN,), jnp.float32)
    b3 = 0.1 * jax.random.normal(kb3, (OUT_CH,), jnp.float32)
    return (w1_oihw, b1, wdw_oihw, bdw, w3_oihw, b3)


def to_kernel_params(p):
    """Pack all six parameter tensors into one (HIDDEN, PCOLS) f32 slab."""
    w1_oihw, b1, wdw_oihw, bdw, w3_oihw, b3 = p
    w1 = w1_oihw[:, :, 0, 0]                            # (hidden, Cin)
    wdw = wdw_oihw[:, 0, :, :].reshape(HIDDEN, 9)       # (hidden, 9), k = 3*ky+kx
    w3 = w3_oihw[:, :, 0, 0]                            # (Cout, hidden)
    slab = jnp.zeros((HIDDEN, PCOLS), jnp.float32)
    slab = slab.at[:, 0:IN_CH].set(w1)
    slab = slab.at[:, IN_CH].set(b1)
    slab = slab.at[:, IN_CH + 1:IN_CH + 10].set(wdw)
    slab = slab.at[:, IN_CH + 10].set(bdw)
    slab = slab.at[:OUT_CH, IN_CH + 11:IN_CH + 11 + HIDDEN].set(w3)
    slab = slab.at[:OUT_CH, IN_CH + 11 + HIDDEN].set(b3)
    return slab


# ---------------- pure-JAX reference (PyTorch NCHW semantics) ----------------
def ref_forward(x, p):
    w1_oihw, b1, wdw_oihw, bdw, w3_oihw, b3 = p
    dn = ('NCHW', 'OIHW', 'NCHW')
    hp = lax.Precision.HIGHEST
    h = lax.conv_general_dilated(x, w1_oihw, (1, 1), 'VALID',
                                 dimension_numbers=dn, precision=hp)
    h = jnp.maximum(h + b1[None, :, None, None], 0.0)
    h = lax.conv_general_dilated(h, wdw_oihw, (1, 1), ((1, 1), (1, 1)),
                                 dimension_numbers=dn,
                                 feature_group_count=HIDDEN, precision=hp)
    h = jnp.maximum(h + bdw[None, :, None, None], 0.0)
    y = lax.conv_general_dilated(h, w3_oihw, (1, 1), 'VALID',
                                 dimension_numbers=dn, precision=hp)
    y = y + b3[None, :, None, None]
    return x + y


if __name__ == "__main__":
    key = jax.random.PRNGKey(0)
    kp, kx = jax.random.split(key)
    params = init_params(kp)
    x = jax.random.normal(kx, (N, IN_CH, H, W), jnp.float32)

    out = inverted_residual_pallas(x, to_kernel_params(params))
    out = jax.block_until_ready(out)

    ref = ref_forward(x, params)
    np.testing.assert_allclose(np.asarray(out), np.asarray(ref),
                               rtol=1e-5, atol=1e-5)
    print("KERNEL_OK")
</pallas_src>

<mosaic_0001>
module attributes {stable_mosaic.version = 11 : i64} {
  func.func @kernel(%arg0: i32, %arg1: memref<8x256xf32, #tpu.memory_space<vmem>>, %arg2: memref<8x24xf32, #tpu.memory_space<vmem>>, %arg3: memref<8x256xf32, #tpu.memory_space<vmem>>, %arg4: memref<8x1024xf32, #tpu.memory_space<vmem>>) attributes {dimension_semantics = [#tpu.dimension_semantics<arbitrary>], iteration_bounds = array<i64: 1>, scalar_prefetch = 0 : i64, scratch_operands = 1 : i64, tpu.core_type = #tpu.core_type<tc>, window_params = [{pipeline_mode = #tpu.pipeline_mode<synchronous>, transform_indices = @transform_0, window_bounds = array<i64: 8, 256>}, {pipeline_mode = #tpu.pipeline_mode<synchronous>, transform_indices = @transform_1, window_bounds = array<i64: 8, 24>}, {pipeline_mode = #tpu.pipeline_mode<synchronous>, transform_indices = @transform_2, window_bounds = array<i64: 8, 256>}]} {
    %c0 = arith.constant 0 : index
    %c0_0 = arith.constant 0 : index
    %0 = vector.load %arg2[%c0, %c0_0] : memref<8x24xf32, #tpu.memory_space<vmem>>, vector<8x24xf32>
    %1 = vector.extract_strided_slice %0 {offsets = [0, 0], sizes = [8, 4], strides = [1, 1]} : vector<8x24xf32> to vector<8x4xf32>
    %2 = vector.extract_strided_slice %0 {offsets = [0, 4], sizes = [8, 1], strides = [1, 1]} : vector<8x24xf32> to vector<8x1xf32>
    %3 = vector.extract_strided_slice %0 {offsets = [0, 5], sizes = [8, 9], strides = [1, 1]} : vector<8x24xf32> to vector<8x9xf32>
    %4 = vector.extract_strided_slice %0 {offsets = [0, 14], sizes = [8, 1], strides = [1, 1]} : vector<8x24xf32> to vector<8x1xf32>
    %5 = vector.extract_strided_slice %0 {offsets = [0, 15], sizes = [4, 8], strides = [1, 1]} : vector<8x24xf32> to vector<4x8xf32>
    %6 = vector.extract_strided_slice %0 {offsets = [0, 23], sizes = [4, 1], strides = [1, 1]} : vector<8x24xf32> to vector<4x1xf32>
    %7 = tpu.iota {dimensions = array<i32: 1>} : vector<8x256xi32>
    %c15_i32 = arith.constant 15 : i32
    %8 = vector.broadcast %c15_i32 : i32 to vector<8x256xi32>
    %9 = arith.andi %7, %8 : vector<8x256xi32>
    %c0_i32 = arith.constant 0 : i32
    %10 = vector.broadcast %c0_i32 : i32 to vector<8x256xi32>
    %11 = arith.cmpi ne, %9, %10 : vector<8x256xi32>
    %c15_i32_1 = arith.constant 15 : i32
    %12 = vector.broadcast %c15_i32_1 : i32 to vector<8x256xi32>
    %13 = arith.cmpi ne, %9, %12 : vector<8x256xi32>
    %cst = arith.constant 0.000000e+00 : f32
    %14 = vector.broadcast %cst : f32 to vector<8x128xf32>
    %c0_2 = arith.constant 0 : index
    %c0_3 = arith.constant 0 : index
    %15 = vector.load %arg4[%c0_2, %c0_3] : memref<8x1024xf32, #tpu.memory_space<vmem>>, vector<8x128xf32>
    tpu.vector_store %arg4[%c0_2, %c0_3], %14 {strides = array<i32>} : memref<8x1024xf32, #tpu.memory_space<vmem>>, vector<8x128xf32>,
    %c0_4 = arith.constant 0 : index
    %c384 = arith.constant 384 : index
    %16 = vector.load %arg4[%c0_4, %c384] : memref<8x1024xf32, #tpu.memory_space<vmem>>, vector<8x128xf32>
    tpu.vector_store %arg4[%c0_4, %c384], %14 {strides = array<i32>} : memref<8x1024xf32, #tpu.memory_space<vmem>>, vector<8x128xf32>,
    %c0_5 = arith.constant 0 : index
    %c512 = arith.constant 512 : index
    %17 = vector.load %arg4[%c0_5, %c512] : memref<8x1024xf32, #tpu.memory_space<vmem>>, vector<8x128xf32>
    tpu.vector_store %arg4[%c0_5, %c512], %14 {strides = array<i32>} : memref<8x1024xf32, #tpu.memory_space<vmem>>, vector<8x128xf32>,
    %c0_6 = arith.constant 0 : index
    %c896 = arith.constant 896 : index
    %18 = vector.load %arg4[%c0_6, %c896] : memref<8x1024xf32, #tpu.memory_space<vmem>>, vector<8x128xf32>
    tpu.vector_store %arg4[%c0_6, %c896], %14 {strides = array<i32>} : memref<8x1024xf32, #tpu.memory_space<vmem>>, vector<8x128xf32>,
    %c0_7 = arith.constant 0 : index
    %c0_8 = arith.constant 0 : index
    %19 = vector.load %arg1[%c0_7, %c0_8] : memref<8x256xf32, #tpu.memory_space<vmem>>, vector<4x256xf32>
    %20 = vector.extract_strided_slice %1 {offsets = [0, 0], sizes = [8, 1], strides = [1, 1]} : vector<8x4xf32> to vector<8x1xf32>
    %21 = vector.extract_strided_slice %19 {offsets = [0, 0], sizes = [1, 256], strides = [1, 1]} : vector<4x256xf32> to vector<1x256xf32>
    %22 = vector.broadcast %20 : vector<8x1xf32> to vector<8x256xf32>
    %23 = vector.broadcast %21 : vector<1x256xf32> to vector<8x256xf32>
    %24 = arith.mulf %22, %23 : vector<8x256xf32>
    %25 = vector.extract_strided_slice %1 {offsets = [0, 1], sizes = [8, 1], strides = [1, 1]} : vector<8x4xf32> to vector<8x1xf32>
    %26 = vector.extract_strided_slice %19 {offsets = [1, 0], sizes = [1, 256], strides = [1, 1]} : vector<4x256xf32> to vector<1x256xf32>
    %27 = vector.broadcast %25 : vector<8x1xf32> to vector<8x256xf32>
    %28 = vector.broadcast %26 : vector<1x256xf32> to vector<8x256xf32>
    %29 = arith.mulf %27, %28 : vector<8x256xf32>
    %30 = arith.addf %24, %29 : vector<8x256xf32>
    %31 = vector.extract_strided_slice %1 {offsets = [0, 2], sizes = [8, 1], strides = [1, 1]} : vector<8x4xf32> to vector<8x1xf32>
    %32 = vector.extract_strided_slice %19 {offsets = [2, 0], sizes = [1, 256], strides = [1, 1]} : vector<4x256xf32> to vector<1x256xf32>
    %33 = vector.broadcast %31 : vector<8x1xf32> to vector<8x256xf32>
    %34 = vector.broadcast %32 : vector<1x256xf32> to vector<8x256xf32>
    %35 = arith.mulf %33, %34 : vector<8x256xf32>
    %36 = arith.addf %30, %35 : vector<8x256xf32>
    %37 = vector.extract_strided_slice %1 {offsets = [0, 3], sizes = [8, 1], strides = [1, 1]} : vector<8x4xf32> to vector<8x1xf32>
    %38 = vector.extract_strided_slice %19 {offsets = [3, 0], sizes = [1, 256], strides = [1, 1]} : vector<4x256xf32> to vector<1x256xf32>
    %39 = vector.broadcast %37 : vector<8x1xf32> to vector<8x256xf32>
    %40 = vector.broadcast %38 : vector<1x256xf32> to vector<8x256xf32>
    %41 = arith.mulf %39, %40 : vector<8x256xf32>
    %42 = arith.addf %36, %41 : vector<8x256xf32>
    %43 = vector.broadcast %2 : vector<8x1xf32> to vector<8x256xf32>
    %44 = arith.addf %42, %43 : vector<8x256xf32>
    %cst_9 = arith.constant 0.000000e+00 : f32
    %45 = vector.broadcast %cst_9 : f32 to vector<8x256xf32>
    %46 = arith.maximumf %44, %45 : vector<8x256xf32>
    %c0_10 = arith.constant 0 : index
    %c128 = arith.constant 128 : index
    %47 = vector.load %arg4[%c0_10, %c128] : memref<8x1024xf32, #tpu.memory_space<vmem>>, vector<8x256xf32>
    tpu.vector_store %arg4[%c0_10, %c128], %46 {strides = array<i32>} : memref<8x1024xf32, #tpu.memory_space<vmem>>, vector<8x256xf32>,
    %c0_11 = arith.constant 0 : index
    %c111 = arith.constant 111 : index
    %48 = vector.load %arg4[%c0_11, %c111] : memref<8x1024xf32, #tpu.memory_space<vmem>>, vector<8x256xf32>
    %49 = vector.extract_strided_slice %3 {offsets = [0, 0], sizes = [8, 1], strides = [1, 1]} : vector<8x9xf32> to vector<8x1xf32>
    %50 = vector.broadcast %49 : vector<8x1xf32> to vector<8x256xf32>
    %51 = arith.mulf %48, %50 : vector<8x256xf32>
    %c0_12 = arith.constant 0 : index
    %c127 = arith.constant 127 : index
    %52 = vector.load %arg4[%c0_12, %c127] : memref<8x1024xf32, #tpu.memory_space<vmem>>, vector<8x256xf32>
    %53 = vector.extract_strided_slice %3 {offsets = [0, 3], sizes = [8, 1], strides = [1, 1]} : vector<8x9xf32> to vector<8x1xf32>
    %54 = vector.broadcast %53 : vector<8x1xf32> to vector<8x256xf32>
    %55 = arith.mulf %52, %54 : vector<8x256xf32>
    %56 = arith.addf %51, %55 : vector<8x256xf32>
    %c0_13 = arith.constant 0 : index
    %c143 = arith.constant 143 : index
    %57 = vector.load %arg4[%c0_13, %c143] : memref<8x1024xf32, #tpu.memory_space<vmem>>, vector<8x256xf32>
    %58 = vector.extract_strided_slice %3 {offsets = [0, 6], sizes = [8, 1], strides = [1, 1]} : vector<8x9xf32> to vector<8x1xf32>
    %59 = vector.broadcast %58 : vector<8x1xf32> to vector<8x256xf32>
    %60 = arith.mulf %57, %59 : vector<8x256xf32>
    %61 = arith.addf %56, %60 : vector<8x256xf32>
    %c0_14 = arith.constant 0 : index
    %c112 = arith.constant 112 : index
    %62 = vector.load %arg4[%c0_14, %c112] : memref<8x1024xf32, #tpu.memory_space<vmem>>, vector<8x256xf32>
    %63 = vector.extract_strided_slice %3 {offsets = [0, 1], sizes = [8, 1], strides = [1, 1]} : vector<8x9xf32> to vector<8x1xf32>
    %64 = vector.broadcast %63 : vector<8x1xf32> to vector<8x256xf32>
    %65 = arith.mulf %62, %64 : vector<8x256xf32>
    %c0_15 = arith.constant 0 : index
    %c128_16 = arith.constant 128 : index
    %66 = vector.load %arg4[%c0_15, %c128_16] : memref<8x1024xf32, #tpu.memory_space<vmem>>, vector<8x256xf32>
    %67 = vector.extract_strided_slice %3 {offsets = [0, 4], sizes = [8, 1], strides = [1, 1]} : vector<8x9xf32> to vector<8x1xf32>
    %68 = vector.broadcast %67 : vector<8x1xf32> to vector<8x256xf32>
    %69 = arith.mulf %66, %68 : vector<8x256xf32>
    %70 = arith.addf %65, %69 : vector<8x256xf32>
    %c0_17 = arith.constant 0 : index
    %c144 = arith.constant 144 : index
    %71 = vector.load %arg4[%c0_17, %c144] : memref<8x1024xf32, #tpu.memory_space<vmem>>, vector<8x256xf32>
    %72 = vector.extract_strided_slice %3 {offsets = [0, 7], sizes = [8, 1], strides = [1, 1]} : vector<8x9xf32> to vector<8x1xf32>
    %73 = vector.broadcast %72 : vector<8x1xf32> to vector<8x256xf32>
    %74 = arith.mulf %71, %73 : vector<8x256xf32>
    %75 = arith.addf %70, %74 : vector<8x256xf32>
    %c0_18 = arith.constant 0 : index
    %c113 = arith.constant 113 : index
    %76 = vector.load %arg4[%c0_18, %c113] : memref<8x1024xf32, #tpu.memory_space<vmem>>, vector<8x256xf32>
    %77 = vector.extract_strided_slice %3 {offsets = [0, 2], sizes = [8, 1], strides = [1, 1]} : vector<8x9xf32> to vector<8x1xf32>
    %78 = vector.broadcast %77 : vector<8x1xf32> to vector<8x256xf32>
    %79 = arith.mulf %76, %78 : vector<8x256xf32>
    %c0_19 = arith.constant 0 : index
    %c129 = arith.constant 129 : index
    %80 = vector.load %arg4[%c0_19, %c129] : memref<8x1024xf32, #tpu.memory_space<vmem>>, vector<8x256xf32>
    %81 = vector.extract_strided_slice %3 {offsets = [0, 5], sizes = [8, 1], strides = [1, 1]} : vector<8x9xf32> to vector<8x1xf32>
    %82 = vector.broadcast %81 : vector<8x1xf32> to vector<8x256xf32>
    %83 = arith.mulf %80, %82 : vector<8x256xf32>
    %84 = arith.addf %79, %83 : vector<8x256xf32>
    %c0_20 = arith.constant 0 : index
    %c145 = arith.constant 145 : index
    %85 = vector.load %arg4[%c0_20, %c145] : memref<8x1024xf32, #tpu.memory_space<vmem>>, vector<8x256xf32>
    %86 = vector.extract_strided_slice %3 {offsets = [0, 8], sizes = [8, 1], strides = [1, 1]} : vector<8x9xf32> to vector<8x1xf32>
    %87 = vector.broadcast %86 : vector<8x1xf32> to vector<8x256xf32>
    %88 = arith.mulf %85, %87 : vector<8x256xf32>
    %89 = arith.addf %84, %88 : vector<8x256xf32>
    %cst_21 = arith.constant 0.000000e+00 : f32
    %90 = vector.broadcast %cst_21 : f32 to vector<8x256xf32>
    %91 = arith.select %11, %61, %90 : vector<8x256xi1>, vector<8x256xf32>
    %92 = arith.addf %91, %75 : vector<8x256xf32>
    %cst_22 = arith.constant 0.000000e+00 : f32
    %93 = vector.broadcast %cst_22 : f32 to vector<8x256xf32>
    %94 = arith.select %13, %89, %93 : vector<8x256xi1>, vector<8x256xf32>
    %95 = arith.addf %92, %94 : vector<8x256xf32>
    %96 = vector.broadcast %4 : vector<8x1xf32> to vector<8x256xf32>
    %97 = arith.addf %95, %96 : vector<8x256xf32>
    %cst_23 = arith.constant 0.000000e+00 : f32
    %98 = vector.broadcast %cst_23 : f32 to vector<8x256xf32>
    %99 = arith.maximumf %97, %98 : vector<8x256xf32>
    %100 = vector.extract_strided_slice %5 {offsets = [0, 0], sizes = [4, 1], strides = [1, 1]} : vector<4x8xf32> to vector<4x1xf32>
    %101 = vector.extract_strided_slice %99 {offsets = [0, 0], sizes = [1, 256], strides = [1, 1]} : vector<8x256xf32> to vector<1x256xf32>
    %102 = vector.broadcast %100 : vector<4x1xf32> to vector<4x256xf32>
    %103 = vector.broadcast %101 : vector<1x256xf32> to vector<4x256xf32>
    %104 = arith.mulf %102, %103 : vector<4x256xf32>
    %105 = vector.extract_strided_slice %5 {offsets = [0, 1], sizes = [4, 1], strides = [1, 1]} : vector<4x8xf32> to vector<4x1xf32>
    %106 = vector.extract_strided_slice %99 {offsets = [1, 0], sizes = [1, 256], strides = [1, 1]} : vector<8x256xf32> to vector<1x256xf32>
    %107 = vector.broadcast %105 : vector<4x1xf32> to vector<4x256xf32>
    %108 = vector.broadcast %106 : vector<1x256xf32> to vector<4x256xf32>
    %109 = arith.mulf %107, %108 : vector<4x256xf32>
    %110 = arith.addf %104, %109 : vector<4x256xf32>
    %111 = vector.extract_strided_slice %5 {offsets = [0, 2], sizes = [4, 1], strides = [1, 1]} : vector<4x8xf32> to vector<4x1xf32>
    %112 = vector.extract_strided_slice %99 {offsets = [2, 0], sizes = [1, 256], strides = [1, 1]} : vector<8x256xf32> to vector<1x256xf32>
    %113 = vector.broadcast %111 : vector<4x1xf32> to vector<4x256xf32>
    %114 = vector.broadcast %112 : vector<1x256xf32> to vector<4x256xf32>
    %115 = arith.mulf %113, %114 : vector<4x256xf32>
    %116 = arith.addf %110, %115 : vector<4x256xf32>
    %117 = vector.extract_strided_slice %5 {offsets = [0, 3], sizes = [4, 1], strides = [1, 1]} : vector<4x8xf32> to vector<4x1xf32>
    %118 = vector.extract_strided_slice %99 {offsets = [3, 0], sizes = [1, 256], strides = [1, 1]} : vector<8x256xf32> to vector<1x256xf32>
    %119 = vector.broadcast %117 : vector<4x1xf32> to vector<4x256xf32>
    %120 = vector.broadcast %118 : vector<1x256xf32> to vector<4x256xf32>
    %121 = arith.mulf %119, %120 : vector<4x256xf32>
    %122 = arith.addf %116, %121 : vector<4x256xf32>
    %123 = vector.extract_strided_slice %5 {offsets = [0, 4], sizes = [4, 1], strides = [1, 1]} : vector<4x8xf32> to vector<4x1xf32>
    %124 = vector.extract_strided_slice %99 {offsets = [4, 0], sizes = [1, 256], strides = [1, 1]} : vector<8x256xf32> to vector<1x256xf32>
    %125 = vector.broadcast %123 : vector<4x1xf32> to vector<4x256xf32>
    %126 = vector.broadcast %124 : vector<1x256xf32> to vector<4x256xf32>
    %127 = arith.mulf %125, %126 : vector<4x256xf32>
    %128 = arith.addf %122, %127 : vector<4x256xf32>
    %129 = vector.extract_strided_slice %5 {offsets = [0, 5], sizes = [4, 1], strides = [1, 1]} : vector<4x8xf32> to vector<4x1xf32>
    %130 = vector.extract_strided_slice %99 {offsets = [5, 0], sizes = [1, 256], strides = [1, 1]} : vector<8x256xf32> to vector<1x256xf32>
    %131 = vector.broadcast %129 : vector<4x1xf32> to vector<4x256xf32>
    %132 = vector.broadcast %130 : vector<1x256xf32> to vector<4x256xf32>
    %133 = arith.mulf %131, %132 : vector<4x256xf32>
    %134 = arith.addf %128, %133 : vector<4x256xf32>
    %135 = vector.extract_strided_slice %5 {offsets = [0, 6], sizes = [4, 1], strides = [1, 1]} : vector<4x8xf32> to vector<4x1xf32>
    %136 = vector.extract_strided_slice %99 {offsets = [6, 0], sizes = [1, 256], strides = [1, 1]} : vector<8x256xf32> to vector<1x256xf32>
    %137 = vector.broadcast %135 : vector<4x1xf32> to vector<4x256xf32>
    %138 = vector.broadcast %136 : vector<1x256xf32> to vector<4x256xf32>
    %139 = arith.mulf %137, %138 : vector<4x256xf32>
    %140 = arith.addf %134, %139 : vector<4x256xf32>
    %141 = vector.extract_strided_slice %5 {offsets = [0, 7], sizes = [4, 1], strides = [1, 1]} : vector<4x8xf32> to vector<4x1xf32>
    %142 = vector.extract_strided_slice %99 {offsets = [7, 0], sizes = [1, 256], strides = [1, 1]} : vector<8x256xf32> to vector<1x256xf32>
    %143 = vector.broadcast %141 : vector<4x1xf32> to vector<4x256xf32>
    %144 = vector.broadcast %142 : vector<1x256xf32> to vector<4x256xf32>
    %145 = arith.mulf %143, %144 : vector<4x256xf32>
    %146 = arith.addf %140, %145 : vector<4x256xf32>
    %147 = arith.addf %19, %146 : vector<4x256xf32>
    %148 = vector.broadcast %6 : vector<4x1xf32> to vector<4x256xf32>
    %149 = arith.addf %147, %148 : vector<4x256xf32>
    %c0_24 = arith.constant 0 : index
    %c0_25 = arith.constant 0 : index
    %150 = vector.load %arg3[%c0_24, %c0_25] : memref<8x256xf32, #tpu.memory_space<vmem>>, vector<4x256xf32>
    tpu.vector_store %arg3[%c0_24, %c0_25], %149 {strides = array<i32>} : memref<8x256xf32, #tpu.memory_space<vmem>>, vector<4x256xf32>,
    %c4 = arith.constant 4 : index
    %c0_26 = arith.constant 0 : index
    %151 = vector.load %arg1[%c4, %c0_26] : memref<8x256xf32, #tpu.memory_space<vmem>>, vector<4x256xf32>
    %152 = vector.extract_strided_slice %1 {offsets = [0, 0], sizes = [8, 1], strides = [1, 1]} : vector<8x4xf32> to vector<8x1xf32>
    %153 = vector.extract_strided_slice %151 {offsets = [0, 0], sizes = [1, 256], strides = [1, 1]} : vector<4x256xf32> to vector<1x256xf32>
    %154 = vector.broadcast %152 : vector<8x1xf32> to vector<8x256xf32>
    %155 = vector.broadcast %153 : vector<1x256xf32> to vector<8x256xf32>
    %156 = arith.mulf %154, %155 : vector<8x256xf32>
    %157 = vector.extract_strided_slice %1 {offsets = [0, 1], sizes = [8, 1], strides = [1, 1]} : vector<8x4xf32> to vector<8x1xf32>
    %158 = vector.extract_strided_slice %151 {offsets = [1, 0], sizes = [1, 256], strides = [1, 1]} : vector<4x256xf32> to vector<1x256xf32>
    %159 = vector.broadcast %157 : vector<8x1xf32> to vector<8x256xf32>
    %160 = vector.broadcast %158 : vector<1x256xf32> to vector<8x256xf32>
    %161 = arith.mulf %159, %160 : vector<8x256xf32>
    %162 = arith.addf %156, %161 : vector<8x256xf32>
    %163 = vector.extract_strided_slice %1 {offsets = [0, 2], sizes = [8, 1], strides = [1, 1]} : vector<8x4xf32> to vector<8x1xf32>
    %164 = vector.extract_strided_slice %151 {offsets = [2, 0], sizes = [1, 256], strides = [1, 1]} : vector<4x256xf32> to vector<1x256xf32>
    %165 = vector.broadcast %163 : vector<8x1xf32> to vector<8x256xf32>
    %166 = vector.broadcast %164 : vector<1x256xf32> to vector<8x256xf32>
    %167 = arith.mulf %165, %166 : vector<8x256xf32>
    %168 = arith.addf %162, %167 : vector<8x256xf32>
    %169 = vector.extract_strided_slice %1 {offsets = [0, 3], sizes = [8, 1], strides = [1, 1]} : vector<8x4xf32> to vector<8x1xf32>
    %170 = vector.extract_strided_slice %151 {offsets = [3, 0], sizes = [1, 256], strides = [1, 1]} : vector<4x256xf32> to vector<1x256xf32>
    %171 = vector.broadcast %169 : vector<8x1xf32> to vector<8x256xf32>
    %172 = vector.broadcast %170 : vector<1x256xf32> to vector<8x256xf32>
    %173 = arith.mulf %171, %172 : vector<8x256xf32>
    %174 = arith.addf %168, %173 : vector<8x256xf32>
    %175 = vector.broadcast %2 : vector<8x1xf32> to vector<8x256xf32>
    %176 = arith.addf %174, %175 : vector<8x256xf32>
    %cst_27 = arith.constant 0.000000e+00 : f32
    %177 = vector.broadcast %cst_27 : f32 to vector<8x256xf32>
    %178 = arith.maximumf %176, %177 : vector<8x256xf32>
    %c0_28 = arith.constant 0 : index
    %c640 = arith.constant 640 : index
    %179 = vector.load %arg4[%c0_28, %c640] : memref<8x1024xf32, #tpu.memory_space<vmem>>, vector<8x256xf32>
    tpu.vector_store %arg4[%c0_28, %c640], %178 {strides = array<i32>} : memref<8x1024xf32, #tpu.memory_space<vmem>>, vector<8x256xf32>,
    %c0_29 = arith.constant 0 : index
    %c623 = arith.constant 623 : index
    %180 = vector.load %arg4[%c0_29, %c623] : memref<8x1024xf32, #tpu.memory_space<vmem>>, vector<8x256xf32>
    %181 = vector.extract_strided_slice %3 {offsets = [0, 0], sizes = [8, 1], strides = [1, 1]} : vector<8x9xf32> to vector<8x1xf32>
    %182 = vector.broadcast %181 : vector<8x1xf32> to vector<8x256xf32>
    %183 = arith.mulf %180, %182 : vector<8x256xf32>
    %c0_30 = arith.constant 0 : index
    %c639 = arith.constant 639 : index
    %184 = vector.load %arg4[%c0_30, %c639] : memref<8x1024xf32, #tpu.memory_space<vmem>>, vector<8x256xf32>
    %185 = vector.extract_strided_slice %3 {offsets = [0, 3], sizes = [8, 1], strides = [1, 1]} : vector<8x9xf32> to vector<8x1xf32>
    %186 = vector.broadcast %185 : vector<8x1xf32> to vector<8x256xf32>
    %187 = arith.mulf %184, %186 : vector<8x256xf32>
    %188 = arith.addf %183, %187 : vector<8x256xf32>
    %c0_31 = arith.constant 0 : index
    %c655 = arith.constant 655 : index
    %189 = vector.load %arg4[%c0_31, %c655] : memref<8x1024xf32, #tpu.memory_space<vmem>>, vector<8x256xf32>
    %190 = vector.extract_strided_slice %3 {offsets = [0, 6], sizes = [8, 1], strides = [1, 1]} : vector<8x9xf32> to vector<8x1xf32>
    %191 = vector.broadcast %190 : vector<8x1xf32> to vector<8x256xf32>
    %192 = arith.mulf %189, %191 : vector<8x256xf32>
    %193 = arith.addf %188, %192 : vector<8x256xf32>
    %c0_32 = arith.constant 0 : index
    %c624 = arith.constant 624 : index
    %194 = vector.load %arg4[%c0_32, %c624] : memref<8x1024xf32, #tpu.memory_space<vmem>>, vector<8x256xf32>
    %195 = vector.extract_strided_slice %3 {offsets = [0, 1], sizes = [8, 1], strides = [1, 1]} : vector<8x9xf32> to vector<8x1xf32>
    %196 = vector.broadcast %195 : vector<8x1xf32> to vector<8x256xf32>
    %197 = arith.mulf %194, %196 : vector<8x256xf32>
    %c0_33 = arith.constant 0 : index
    %c640_34 = arith.constant 640 : index
    %198 = vector.load %arg4[%c0_33, %c640_34] : memref<8x1024xf32, #tpu.memory_space<vmem>>, vector<8x256xf32>
    %199 = vector.extract_strided_slice %3 {offsets = [0, 4], sizes = [8, 1], strides = [1, 1]} : vector<8x9xf32> to vector<8x1xf32>
    %200 = vector.broadcast %199 : vector<8x1xf32> to vector<8x256xf32>
    %201 = arith.mulf %198, %200 : vector<8x256xf32>
    %202 = arith.addf %197, %201 : vector<8x256xf32>
    %c0_35 = arith.constant 0 : index
    %c656 = arith.constant 656 : index
    %203 = vector.load %arg4[%c0_35, %c656] : memref<8x1024xf32, #tpu.memory_space<vmem>>, vector<8x256xf32>
    %204 = vector.extract_strided_slice %3 {offsets = [0, 7], sizes = [8, 1], strides = [1, 1]} : vector<8x9xf32> to vector<8x1xf32>
    %205 = vector.broadcast %204 : vector<8x1xf32> to vector<8x256xf32>
    %206 = arith.mulf %203, %205 : vector<8x256xf32>
    %207 = arith.addf %202, %206 : vector<8x256xf32>
    %c0_36 = arith.constant 0 : index
    %c625 = arith.constant 625 : index
    %208 = vector.load %arg4[%c0_36, %c625] : memref<8x1024xf32, #tpu.memory_space<vmem>>, vector<8x256xf32>
    %209 = vector.extract_strided_slice %3 {offsets = [0, 2], sizes = [8, 1], strides = [1, 1]} : vector<8x9xf32> to vector<8x1xf32>
    %210 = vector.broadcast %209 : vector<8x1xf32> to vector<8x256xf32>
    %211 = arith.mulf %208, %210 : vector<8x256xf32>
    %c0_37 = arith.constant 0 : index
    %c641 = arith.constant 641 : index
    %212 = vector.load %arg4[%c0_37, %c641] : memref<8x1024xf32, #tpu.memory_space<vmem>>, vector<8x256xf32>
    %213 = vector.extract_strided_slice %3 {offsets = [0, 5], sizes = [8, 1], strides = [1, 1]} : vector<8x9xf32> to vector<8x1xf32>
    %214 = vector.broadcast %213 : vector<8x1xf32> to vector<8x256xf32>
    %215 = arith.mulf %212, %214 : vector<8x256xf32>
    %216 = arith.addf %211, %215 : vector<8x256xf32>
    %c0_38 = arith.constant 0 : index
    %c657 = arith.constant 657 : index
    %217 = vector.load %arg4[%c0_38, %c657] : memref<8x1024xf32, #tpu.memory_space<vmem>>, vector<8x256xf32>
    %218 = vector.extract_strided_slice %3 {offsets = [0, 8], sizes = [8, 1], strides = [1, 1]} : vector<8x9xf32> to vector<8x1xf32>
    %219 = vector.broadcast %218 : vector<8x1xf32> to vector<8x256xf32>
    %220 = arith.mulf %217, %219 : vector<8x256xf32>
    %221 = arith.addf %216, %220 : vector<8x256xf32>
    %cst_39 = arith.constant 0.000000e+00 : f32
    %222 = vector.broadcast %cst_39 : f32 to vector<8x256xf32>
    %223 = arith.select %11, %193, %222 : vector<8x256xi1>, vector<8x256xf32>
    %224 = arith.addf %223, %207 : vector<8x256xf32>
    %cst_40 = arith.constant 0.000000e+00 : f32
    %225 = vector.broadcast %cst_40 : f32 to vector<8x256xf32>
    %226 = arith.select %13, %221, %225 : vector<8x256xi1>, vector<8x256xf32>
    %227 = arith.addf %224, %226 : vector<8x256xf32>
    %228 = vector.broadcast %4 : vector<8x1xf32> to vector<8x256xf32>
    %229 = arith.addf %227, %228 : vector<8x256xf32>
    %cst_41 = arith.constant 0.000000e+00 : f32
    %230 = vector.broadcast %cst_41 : f32 to vector<8x256xf32>
    %231 = arith.maximumf %229, %230 : vector<8x256xf32>
    %232 = vector.extract_strided_slice %5 {offsets = [0, 0], sizes = [4, 1], strides = [1, 1]} : vector<4x8xf32> to vector<4x1xf32>
    %233 = vector.extract_strided_slice %231 {offsets = [0, 0], sizes = [1, 256], strides = [1, 1]} : vector<8x256xf32> to vector<1x256xf32>
    %234 = vector.broadcast %232 : vector<4x1xf32> to vector<4x256xf32>
    %235 = vector.broadcast %233 : vector<1x256xf32> to vector<4x256xf32>
    %236 = arith.mulf %234, %235 : vector<4x256xf32>
    %237 = vector.extract_strided_slice %5 {offsets = [0, 1], sizes = [4, 1], strides = [1, 1]} : vector<4x8xf32> to vector<4x1xf32>
    %238 = vector.extract_strided_slice %231 {offsets = [1, 0], sizes = [1, 256], strides = [1, 1]} : vector<8x256xf32> to vector<1x256xf32>
    %239 = vector.broadcast %237 : vector<4x1xf32> to vector<4x256xf32>
    %240 = vector.broadcast %238 : vector<1x256xf32> to vector<4x256xf32>
    %241 = arith.mulf %239, %240 : vector<4x256xf32>
    %242 = arith.addf %236, %241 : vector<4x256xf32>
    %243 = vector.extract_strided_slice %5 {offsets = [0, 2], sizes = [4, 1], strides = [1, 1]} : vector<4x8xf32> to vector<4x1xf32>
    %244 = vector.extract_strided_slice %231 {offsets = [2, 0], sizes = [1, 256], strides = [1, 1]} : vector<8x256xf32> to vector<1x256xf32>
    %245 = vector.broadcast %243 : vector<4x1xf32> to vector<4x256xf32>
    %246 = vector.broadcast %244 : vector<1x256xf32> to vector<4x256xf32>
    %247 = arith.mulf %245, %246 : vector<4x256xf32>
    %248 = arith.addf %242, %247 : vector<4x256xf32>
    %249 = vector.extract_strided_slice %5 {offsets = [0, 3], sizes = [4, 1], strides = [1, 1]} : vector<4x8xf32> to vector<4x1xf32>
    %250 = vector.extract_strided_slice %231 {offsets = [3, 0], sizes = [1, 256], strides = [1, 1]} : vector<8x256xf32> to vector<1x256xf32>
    %251 = vector.broadcast %249 : vector<4x1xf32> to vector<4x256xf32>
    %252 = vector.broadcast %250 : vector<1x256xf32> to vector<4x256xf32>
    %253 = arith.mulf %251, %252 : vector<4x256xf32>
    %254 = arith.addf %248, %253 : vector<4x256xf32>
    %255 = vector.extract_strided_slice %5 {offsets = [0, 4], sizes = [4, 1], strides = [1, 1]} : vector<4x8xf32> to vector<4x1xf32>
    %256 = vector.extract_strided_slice %231 {offsets = [4, 0], sizes = [1, 256], strides = [1, 1]} : vector<8x256xf32> to vector<1x256xf32>
    %257 = vector.broadcast %255 : vector<4x1xf32> to vector<4x256xf32>
    %258 = vector.broadcast %256 : vector<1x256xf32> to vector<4x256xf32>
    %259 = arith.mulf %257, %258 : vector<4x256xf32>
    %260 = arith.addf %254, %259 : vector<4x256xf32>
    %261 = vector.extract_strided_slice %5 {offsets = [0, 5], sizes = [4, 1], strides = [1, 1]} : vector<4x8xf32> to vector<4x1xf32>
    %262 = vector.extract_strided_slice %231 {offsets = [5, 0], sizes = [1, 256], strides = [1, 1]} : vector<8x256xf32> to vector<1x256xf32>
    %263 = vector.broadcast %261 : vector<4x1xf32> to vector<4x256xf32>
    %264 = vector.broadcast %262 : vector<1x256xf32> to vector<4x256xf32>
    %265 = arith.mulf %263, %264 : vector<4x256xf32>
    %266 = arith.addf %260, %265 : vector<4x256xf32>
    %267 = vector.extract_strided_slice %5 {offsets = [0, 6], sizes = [4, 1], strides = [1, 1]} : vector<4x8xf32> to vector<4x1xf32>
    %268 = vector.extract_strided_slice %231 {offsets = [6, 0], sizes = [1, 256], strides = [1, 1]} : vector<8x256xf32> to vector<1x256xf32>
    %269 = vector.broadcast %267 : vector<4x1xf32> to vector<4x256xf32>
    %270 = vector.broadcast %268 : vector<1x256xf32> to vector<4x256xf32>
    %271 = arith.mulf %269, %270 : vector<4x256xf32>
    %272 = arith.addf %266, %271 : vector<4x256xf32>
    %273 = vector.extract_strided_slice %5 {offsets = [0, 7], sizes = [4, 1], strides = [1, 1]} : vector<4x8xf32> to vector<4x1xf32>
    %274 = vector.extract_strided_slice %231 {offsets = [7, 0], sizes = [1, 256], strides = [1, 1]} : vector<8x256xf32> to vector<1x256xf32>
    %275 = vector.broadcast %273 : vector<4x1xf32> to vector<4x256xf32>
    %276 = vector.broadcast %274 : vector<1x256xf32> to vector<4x256xf32>
    %277 = arith.mulf %275, %276 : vector<4x256xf32>
    %278 = arith.addf %272, %277 : vector<4x256xf32>
    %279 = arith.addf %151, %278 : vector<4x256xf32>
    %280 = vector.broadcast %6 : vector<4x1xf32> to vector<4x256xf32>
    %281 = arith.addf %279, %280 : vector<4x256xf32>
    %c4_42 = arith.constant 4 : index
    %c0_43 = arith.constant 0 : index
    %282 = vector.load %arg3[%c4_42, %c0_43] : memref<8x256xf32, #tpu.memory_space<vmem>>, vector<4x256xf32>
    tpu.vector_store %arg3[%c4_42, %c0_43], %281 {strides = array<i32>} : memref<8x256xf32, #tpu.memory_space<vmem>>, vector<4x256xf32>,
    return
  }
  func.func @transform_0(%arg0: i32) -> (i32, i32) {
    %c0_i32 = arith.constant 0 : i32
    %c0_i32_0 = arith.constant 0 : i32
    %c0_i32_1 = arith.constant 0 : i32
    return %c0_i32, %c0_i32_0 : i32, i32
  }
  func.func @transform_1(%arg0: i32) -> (i32, i32) {
    %c0_i32 = arith.constant 0 : i32
    %c0_i32_0 = arith.constant 0 : i32
    %c0_i32_1 = arith.constant 0 : i32
    return %c0_i32, %c0_i32_0 : i32, i32
  }
  func.func @transform_2(%arg0: i32) -> (i32, i32) {
    %c0_i32 = arith.constant 0 : i32
    %c0_i32_0 = arith.constant 0 : i32
    %c0_i32_1 = arith.constant 0 : i32
    return %c0_i32, %c0_i32_0 : i32, i32
  }
}

</mosaic_0001>

<bundles_post_ra>
// kernel: tpu_custom_call.1
= control target key start
LH: loop header
LB: loop body
LE: loop exit
PB: predicated region body
PF: predicated region fallthrough
CT: control target
= control target key end

     0   :  { %7 = vsyncpa [#allocation4], 0  ;;  %s1547_s0 = inlined_call_operand.hbm [shape: f32[8,256], index: 0, kind: input, shape index: {}]   ;;  %s1548_s1 = inlined_call_operand.hbm [shape: f32[8,24], index: 1, kind: input, shape index: {}]   ;;  %s1549_s2 = inlined_call_operand.hbm [shape: f32[8,256], index: 2, kind: output, shape index: {}]  }
   0x1   :  { %8 = vsyncpa [#allocation7], 0 }
   0x2   :  { %9 = vsyncpa [#allocation5], 0  ;;  %s975_s9 = smov [#allocation3]   ;;  %s976_s11 = smov [#allocation6]  }
   0x3   :  { %s16_s10 = sshll.u32 %s975_s9, 4  ;;  %s26_s12 = sshll.u32 %s976_s11, 4  ;;  %s17_s10 = int_to_ptr.vmem [resolvable:$true] %s16_s10  ;;  %s27_s12 = int_to_ptr.vmem [resolvable:$true] %s26_s12 }
   0x4   :  { %s903_s15 = scalar_lea.hbm %s1547_s0, 256 }
   0x5   :  { %p904_p0 = scmp.ne.s32.totalorder %s1547_s0, %s903_s15  ;;  %p907_p1 = scmp.lt.u32.totalorder %s903_s15, %s1547_s0 }
   0x7   :  { %p909_p2 = pnand %p907_p1, %p904_p0 }
   0x9   :  { %912 = shalt.err (!%p909_p2)
}
   0xa   :  { %s913_s20 = scalar_lea.vmem %s17_s10, 256  ;;  %p918_p4 = scmp.lt.s32.totalorder %s17_s10, %s17_s10 }
   0xb   :  { %p914_p3 = scmp.ne.s32.totalorder %s17_s10, %s913_s20  ;;  %p919_p5 = scmp.lt.s32.totalorder %s913_s20, %s913_s20 }
   0xd   :  { %p920_p6 = por %p919_p5, %p918_p4 }
   0xf   :  { %p921_p7 = pnand %p920_p6, %p914_p3 }
  0x11   :  { %924 = shalt.err (!%p921_p7)
}
  0x12   :  { %19 = dma.hbm_to_vmem [thread:$0]  %s1547_s0, 256, %s17_s10, [#allocation4]  }
  0x13   :  { %s925_s25 = scalar_lea.hbm %s1548_s1, 128 }
  0x14   :  { %p926_p8 = scmp.ne.s32.totalorder %s1548_s1, %s925_s25  ;;  %p929_p9 = scmp.lt.u32.totalorder %s925_s25, %s1548_s1 }
  0x16   :  { %p931_p10 = pnand %p929_p9, %p926_p8 }
  0x18   :  { %934 = shalt.err (!%p931_p10)
}
  0x19   :  { %s935_s30 = scalar_lea.vmem %s27_s12, 128  ;;  %p940_p12 = scmp.lt.s32.totalorder %s27_s12, %s27_s12 }
  0x1a   :  { %p936_p11 = scmp.ne.s32.totalorder %s27_s12, %s935_s30  ;;  %p941_p13 = scmp.lt.s32.totalorder %s935_s30, %s935_s30 }
  0x1c   :  { %p942_p0 = por %p941_p13, %p940_p12 }
  0x1e   :  { %p943_p1 = pnand %p942_p0, %p936_p11 }
  0x20   :  { %946 = shalt.err (!%p943_p1)
}
  0x21   :  { %29 = dma.hbm_to_vmem [thread:$0]  %s1548_s1, 128, %s27_s12, [#allocation7]  }
  0x22   :  { %969 = dma.done.wait [#allocation4], 256  }
  0x23   :  { %970 = vsyncadd [#allocation4], 4294967040 }
  0x24   :  { %971 = dma.done.wait [#allocation7], 128  }
  0x25   :  { %972 = vsyncadd [#allocation7], 4294967168  ;;  %v977_v0 = vmov 2   ;;  %v978_v1 = vmov 0   ;;  %v1046_v2 = vld [vmem:[#allocation6] sm:$0xff]  ;;  %v979_v3 = vmov 3   ;;  %v37_v15 = vlaneseq }
  0x26   :  { %880 = vset.pattern.permute.xlu1 %v977_v0  ;;  %878 = vset.pattern.permute.xlu0 %v978_v1  ;;  %v980_v4 = vmov 1   ;;  %v981_v5 = vmov 4   ;;  %v982_v6 = vmov 8   ;;  %v983_v7 = vmov 9   ;;  %v1069_v22 = vld [vmem:[#allocation3] sm:$0xf0] }
  0x27   :  { %84 = vperm.xlu1 %880, %v1046_v2   ;;  %54 = vperm.xlu0 %878, %v1046_v2   ;;  %v984_v8 = vmov 10   ;;  %v985_v9 = vmov 11   ;;  %v986_v10 = vmov 5   ;;  %v987_v11 = vmov 12   ;;  %v1079_v28 = vld [vmem:[#allocation3] sm:$0xf] }
  0x28   :  { %v988_v12 = vmov 13   ;;  %v989_v13 = vmov 6   ;;  %v990_v14 = vmov 7   ;;  %v58_v18 = vshrl.u32 %v37_v15, 7  ;;  %v1081_v29 = vld [vmem:[#allocation3 + $0x8] sm:$0xf] }
  0x29   :  { %v1085_v31 = vld [vmem:[#allocation3 + $0x8] sm:$0xf0]  ;;  %s991_s1 = smov 112   ;;  %v992_v55 = vmov 14   ;;  %s993_s4 = smov 96   ;;  %vm179_vm0 = vcmask 785408  }
  0x2a   :  { %v1063_v19 = vsub.s32 4, %v58_v18  ;;  %v1065_v20 = vsub.s32 5, %v58_v18  ;;  %v1071_v23 = vsub.s32 0, %v58_v18  ;;  %v1075_v26 = vsub.s32 1, %v58_v18  ;;  %s998_s5 = smov 17   ;;  %s999_s6 = smov 16  }
  0x2b   :  { %881 = vset.pattern.permute.xlu1 %v979_v3  ;;  %879 = vset.pattern.permute.xlu0 %v980_v4  ;;  %v1083_v30 = vsub.s32 6, %v58_v18  ;;  %v1104_v43 = vsub.s32 2, %v58_v18  ;;  %v1108_v45 = vsub.s32 7, %v58_v18  ;;  %v1118_v57 = vsub.s32 3, %v58_v18  ;;  %s1000_s7 = smov 15   ;;  %s1006_s8 = smov [#allocation8]  }
  0x2c   :  { %100 = vperm.xlu1 %881, %v1046_v2   ;;  %68 = vperm.xlu0 %879, %v1046_v2   ;;  %v492_v25 = vrot.slane %v1069_v22, %v1063_v19  ;;  %v502_v27 = vrot.slane %v1069_v22, %v1065_v20  ;;  %v60_v32 = vrot.slane %v1079_v28, %v1071_v23  ;;  %vm151_vm1 = vcmask 916480   ;;  %s836_s9 = sshll.u32 %s1006_s8, 4  ;;  %s837_s9 = int_to_ptr.vmem [resolvable:$true] %s836_s9 }
  0x2d   :  { %v64_v33 = vrot.slane %v1081_v29, %v1071_v23  ;;  %v496_v34 = vrot.slane %v1085_v31, %v1063_v19  ;;  %v506_v35 = vrot.slane %v1085_v31, %v1065_v20  ;;  %v74_v39 = vrot.slane %v1079_v28, %v1075_v26  ;;  %s947_s10 = scalar_lea.vmem %s837_s9, 256  ;;  %p952_p3 = scmp.lt.s32.totalorder %s837_s9, %s837_s9 }
  0x2e   :  { %v78_v40 = vrot.slane %v1081_v29, %v1075_v26  ;;  %v514_v44 = vrot.slane %v1069_v22, %v1083_v30  ;;  %v518_v56 = vrot.slane %v1085_v31, %v1083_v30  ;;  %v90_v59 = vrot.slane %v1079_v28, %v1104_v43  ;;  %p948_p2 = scmp.ne.s32.totalorder %s837_s9, %s947_s10  ;;  %p953_p4 = scmp.lt.s32.totalorder %s947_s10, %s947_s10 }
  0x2f   :  { %v94_v60 = vrot.slane %v1081_v29, %v1104_v43  ;;  %v526_v62 = vrot.slane %v1069_v22, %v1108_v45  ;;  %vm302_vm2 = vcmask 138240   ;;  %vm318_vm5 = vcmask 130048  }
  0x30   :  { %882 = vset.pattern.permute.xlu1 %v981_v5  ;;  %883 = vset.pattern.permute.xlu0 %v982_v6  ;;  %v106_v5 = vrot.slane %v1079_v28, %v1118_v57  ;;  %v110_v6 = vrot.slane %v1081_v29, %v1118_v57  ;;  %vm334_vm6 = vcmask 121856   ;;  %p954_p5 = por %p953_p4, %p952_p3 }
  0x31   :  { %116 = vperm.xlu1 %882, %v1046_v2   ;;  %136 = vperm.xlu0 %883, %v1046_v2  }
  0x32   :  { %p955_p6 = pnand %p954_p5, %p948_p2 }
  0x35   :  { %884 = vset.pattern.permute.xlu1 %v983_v7  ;;  %886 = vset.pattern.permute.xlu0 %v984_v8  ;;  %v530_v7 = vrot.slane %v1085_v31, %v1108_v45 }
  0x36   :  { %196 = vperm.xlu1 %884, %v1046_v2   ;;  %246 = vperm.xlu0 %886, %v1046_v2  }
  0x3a   :  { %885 = vset.pattern.permute.xlu1 %v985_v9  ;;  %889 = vset.pattern.permute.xlu0 %v986_v10 }
  0x3b   :  { %164 = vperm.xlu1 %885, %v1046_v2   ;;  %129 = vperm.xlu0 %889, %v1046_v2  }
  0x3f   :  { %887 = vset.pattern.permute.xlu1 %v987_v11  ;;  %892 = vset.pattern.permute.xlu0 %v992_v55 }
  0x40   :  { %215 = vperm.xlu1 %887, %v1046_v2  }
  0x44   :  { %888 = vset.pattern.permute.xlu1 %v988_v12 }
  0x45   :  { %270 = vperm.xlu1 %888, %v1046_v2  }
  0x49   :  { %890 = vset.pattern.permute.xlu1 %v989_v13 }
  0x4a   :  { %189 = vperm.xlu1 %890, %v1046_v2  }
  0x4e   :  { %891 = vset.pattern.permute.xlu1 %v990_v14 }
  0x4f   :  { %239 = vperm.xlu1 %891, %v1046_v2  }
  0xa6   :  { %v85_v16 = vpop.permute.xlu1 %84  ;;  %v55_v17 = vpop.permute.xlu0 %54 }
  0xa7   :  { %v497_v38 = vmul.f32 %v492_v25, %v55_v17  ;;  %v65_v46 = vmul.f32 %v60_v32, %v55_v17  ;;  %v498_v47 = vmul.f32 %v496_v34, %v55_v17  ;;  %v66_v49 = vmul.f32 %v64_v33, %v55_v17 }
  0xa8   :  { %v519_v61 = vmul.f32 %v514_v44, %v85_v16  ;;  %v520_v4 = vmul.f32 %v518_v56, %v85_v16  ;;  %v95_v9 = vmul.f32 %v90_v59, %v85_v16  ;;  %v96_v10 = vmul.f32 %v94_v60, %v85_v16 }
  0xa9   :  { %v994_v56 = vmov 16  }
  0xaa   :  { %894 = vset.pattern.permute.xlu1 %v994_v56 }
  0xab   :  { %v1067_v21 = vpop.permute.xlu1 %100  ;;  %v69_v24 = vpop.permute.xlu0 %68 }
  0xac   :  { %v507_v41 = vmul.f32 %v502_v27, %v69_v24  ;;  %v508_v48 = vmul.f32 %v506_v35, %v69_v24  ;;  %v79_v50 = vmul.f32 %v74_v39, %v69_v24  ;;  %v80_v51 = vmul.f32 %v78_v40, %v69_v24 }
  0xad   :  { %v531_v11 = vmul.f32 %v526_v62, %v1067_v21  ;;  %v532_v24 = vmul.f32 %v530_v7, %v1067_v21  ;;  %v111_v25 = vmul.f32 %v106_v5, %v1067_v21  ;;  %v112_v27 = vmul.f32 %v110_v6, %v1067_v21 }
  0xae   :  { %v509_v52 = vadd.f32 %v507_v41, %v497_v38  ;;  %v510_v63 = vadd.f32 %v508_v48, %v498_v47  ;;  %v81_v0 = vadd.f32 %v79_v50, %v65_v46  ;;  %v82_v1 = vadd.f32 %v80_v51, %v66_v49 }
  0xb0   :  { %v1095_v36 = vpop.permute.xlu1 %116  ;;  %v1097_v37 = vpop.permute.xlu0 %136  ;;  %v521_v3 = vadd.f32 %v519_v61, %v509_v52  ;;  %v522_v13 = vadd.f32 %v520_v4, %v510_v63  ;;  %v97_v14 = vadd.f32 %v95_v9, %v81_v0  ;;  %v98_v17 = vadd.f32 %v96_v10, %v82_v1 }
  0xb1   :  { %v139_v42 = vmul.f32 0.0, %v1097_v37 }
  0xb2   :  { %v533_v18 = vadd.f32 %v531_v11, %v521_v3  ;;  %v534_v32 = vadd.f32 %v532_v24, %v522_v13  ;;  %v113_v34 = vadd.f32 %v111_v25, %v97_v14  ;;  %v114_v35 = vadd.f32 %v112_v27, %v98_v17 }
  0xb3   :  { %145 = vrot.lane.b32.xlu1 %v139_v42, %s991_s1  ;;  %553 = vrot.lane.b32.xlu0 %v139_v42, %s991_s1  ;;  %v995_v14 = vmov 15   ;;  %v996_v17 = vmov 17  }
  0xb4   :  { %v535_v38 = vadd.f32 %v533_v18, %v1095_v36  ;;  %v536_v39 = vadd.f32 %v534_v32, %v1095_v36  ;;  %v119_v41 = vadd.f32 %v1095_v36, %v113_v34  ;;  %v120_v42 = vadd.f32 %v1095_v36, %v114_v35 }
  0xb5   :  { %v1112_v53 = vpop.permute.xlu1 %196  ;;  %v1114_v54 = vpop.permute.xlu0 %246  ;;  %v997_v18 = vmov 18  }
  0xb6   :  { %v251_v58 = vmul.f32 0.0, %v1114_v54  ;;  %v1153_v21 = vmax.f32 %v535_v38, 0.0  ;;  %v1158_v46 = vmax.f32 %v536_v39, 0.0  ;;  %v1160_v47 = vmax.f32 %v119_v41, 0.0 }
  0xb7   :  { %v1162_v48 = vmax.f32 %v120_v42, 0.0 }
  0xb8   :  { %641 = vrot.lane.b32.xlu1 %v251_v58, %s991_s1  ;;  %v548_v50 = vmul.f32 %v1153_v21, %v1097_v37  ;;  %v549_v55 = vmul.f32 %v1158_v46, %v1097_v37  ;;  %v594_v59 = vmul.f32 %v1158_v46, %v1112_v53  ;;  %v140_v61 = vmul.f32 %v1097_v37, %v1160_v47 }
  0xb9   :  { %v141_v60 = vmul.f32 %v1097_v37, %v1162_v48  ;;  %v631_v0 = vmul.f32 %v1153_v21, %v1114_v54  ;;  %v632_v37 = vmul.f32 %v1158_v46, %v1114_v54  ;;  %v200_v1 = vmul.f32 %v1112_v53, %v1162_v48 }
  0xba   :  { %v1134_v8 = vpop.permute.xlu1 %164  ;;  %v199_v3 = vmul.f32 %v1112_v53, %v1160_v47  ;;  %v250_v7 = vmul.f32 %v1114_v54, %v1162_v48  ;;  %v249_v9 = vmul.f32 %v1114_v54, %v1160_v47  ;;  %v1255_v24 = vpop.permute.xlu0 %129 }
  0xbb   :  { %v169_v12 = vmul.f32 0.0, %v1134_v8  ;;  %v571_v62 = vmul.f32 %v1158_v46, %v1134_v8  ;;  %v570_v63 = vmul.f32 %v1153_v21, %v1134_v8  ;;  %v167_v6 = vmul.f32 %v1134_v8, %v1160_v47 }
  0xbc   :  { %v546_v56 = vmul.f32 %v1158_v46, %v1255_v24 }
  0xbd   :  { %580 = vrot.lane.b32.xlu0 %v169_v12, %s993_s4  ;;  %177 = vrot.lane.b32.xlu1 %v169_v12, %s993_s4 }
  0xbf   :  { %v1143_v16 = vpop.permute.xlu1 %215 }
  0xc0   :  { %v220_v33 = vmul.f32 0.0, %v1143_v16  ;;  %v609_v4 = vmul.f32 %v1158_v46, %v1143_v16  ;;  %v608_v5 = vmul.f32 %v1153_v21, %v1143_v16  ;;  %v219_v11 = vmul.f32 %v1143_v16, %v1162_v48 }
  0xc1   :  { %v218_v54 = vmul.f32 %v1143_v16, %v1160_v47 }
  0xc2   :  { %618 = vrot.lane.b32.xlu0 %v220_v33, %s993_s4 }
  0xc4   :  { %v1149_v40 = vpop.permute.xlu1 %270 }
  0xc5   :  { %v275_v44 = vmul.f32 0.0, %v1149_v40  ;;  %v651_v10 = vmul.f32 %v1153_v21, %v1149_v40  ;;  %v273_v12 = vmul.f32 %v1149_v40, %v1160_v47  ;;  %v274_v13 = vmul.f32 %v1149_v40, %v1162_v48 }
  0xc6   :  { %259 = vrot.lane.b32.xlu0 %v251_v58, %s991_s1  ;;  %v593_v58 = vmul.f32 %v1153_v21, %v1112_v53  ;;  %v168_v53 = vmul.f32 %v1134_v8, %v1162_v48  ;;  %v652_v8 = vmul.f32 %v1158_v46, %v1149_v40 }
  0xc7   :  { %661 = vrot.lane.b32.xlu1 %v275_v44, %s993_s4 }
  0xc9   :  { %v1164_v49 = vpop.permute.xlu1 %189 }
  0xca   :  { %228 = vrot.lane.b32.xlu0 %v220_v33, %s993_s4  ;;  %v1171_v36 = vmul.f32 %v1153_v21, %v1164_v49  ;;  %v1176_v51 = vmul.f32 %v1164_v49, %v1162_v48  ;;  %v1180_v52 = vmul.f32 %v1164_v49, %v1160_v47 }
  0xcb   :  { %555 = vrot.lane.b32.xlu1 %v548_v50, %s991_s1 }
  0xce   :  { %557 = vrot.lane.b32.xlu0 %v549_v55, %s991_s1  ;;  %v1257_v25 = vpop.permute.xlu1 %239 }
  0xcf   :  { %597 = vrot.lane.b32.xlu1 %v593_v58, %s991_s1 }
  0xd2   :  { %599 = vrot.lane.b32.xlu0 %v594_v59, %s991_s1 }
  0xd3   :  { %149 = vrot.lane.b32.xlu1 %v141_v60, %s991_s1 }
  0xd6   :  { %147 = vrot.lane.b32.xlu0 %v140_v61, %s991_s1 }
  0xd7   :  { %578 = vrot.lane.b32.xlu1 %v571_v62, %s993_s4 }
  0xda   :  { %576 = vrot.lane.b32.xlu0 %v570_v63, %s993_s4 }
  0xdb   :  { %637 = vrot.lane.b32.xlu1 %v631_v0, %s991_s1 }
  0xde   :  { %639 = vrot.lane.b32.xlu0 %v632_v37, %s991_s1  ;;  %v630_v37 = vmul.f32 %v1158_v46, %v1257_v25 }
  0xdf   :  { %205 = vrot.lane.b32.xlu1 %v200_v1, %s991_s1 }
  0xe2   :  { %203 = vrot.lane.b32.xlu0 %v199_v3, %s991_s1 }
  0xe3   :  { %616 = vrot.lane.b32.xlu1 %v609_v4, %s993_s4 }
  0xe6   :  { %614 = vrot.lane.b32.xlu0 %v608_v5, %s993_s4 }
  0xe7   :  { %173 = vrot.lane.b32.xlu1 %v167_v6, %s993_s4 }
  0xea   :  { %175 = vrot.lane.b32.xlu0 %v168_v53, %s993_s4  ;;  %v192_v53 = vmul.f32 0.0, %v1164_v49 }
  0xeb   :  { %257 = vrot.lane.b32.xlu1 %v250_v7, %s991_s1 }
  0xee   :  { %255 = vrot.lane.b32.xlu0 %v249_v9, %s991_s1 }
  0xef   :  { %657 = vrot.lane.b32.xlu1 %v651_v10, %s993_s4 }
  0xf2   :  { %659 = vrot.lane.b32.xlu0 %v652_v8, %s993_s4  ;;  %v592_v8 = vmul.f32 %v1158_v46, %v1164_v49  ;;  %v244_v46 = vmul.f32 %v1257_v25, %v1162_v48 }
  0xf3   :  { %226 = vrot.lane.b32.xlu1 %v219_v11, %s993_s4 }
  0xf6   :  { %224 = vrot.lane.b32.xlu0 %v218_v54, %s993_s4 }
  0xf7   :  { %279 = vrot.lane.b32.xlu1 %v273_v12, %s993_s4  ;;  %v134_v12 = vmul.f32 %v1255_v24, %v1162_v48 }
  0xfa   :  { %281 = vrot.lane.b32.xlu0 %v274_v13, %s993_s4 }
  0xfb   :  { %283 = vrot.lane.b32.xlu1 %v275_v44, %s993_s4 }
  0xfe   :  { %344 = vperm.xlu0 %892, %v1046_v2  }
  0xff   :  { %366 = vperm.xlu1 %894, %v1046_v2  }
 0x102   :  { %893 = vset.pattern.permute.xlu0 %v995_v14 }
 0x103   :  { %352 = vperm.xlu0 %893, %v1046_v2   ;;  %895 = vset.pattern.permute.xlu1 %v996_v17 }
 0x107   :  { %896 = vset.pattern.permute.xlu0 %v997_v18 }
 0x125   :  { %v1259_v27 = vpop.permute.xlu1 %145  ;;  %v1261_v16 = vpop.permute.xlu0 %553 }
 0x12a   :  { %v642_v32 = vpop.permute.xlu1 %641 }
 0x12f   :  { %v581_v33 = vpop.permute.xlu0 %580  ;;  %v178_v35 = vpop.permute.xlu1 %177 }
 0x134   :  { %v619_v34 = vpop.permute.xlu0 %618 }
 0x138   :  { %v260_v38 = vpop.permute.xlu0 %259 }
 0x139   :  { %v1263_v39 = vpop.permute.xlu1 %661 }
 0x13c   :  { %v1265_v40 = vpop.permute.xlu0 %228 }
 0x13d   :  { %v1267_v41 = vpop.permute.xlu1 %555 }
 0x140   :  { %v1269_v42 = vpop.permute.xlu0 %557 }
 0x141   :  { %v1271_v44 = vpop.permute.xlu1 %597  ;;  %v566_v59 = vadd.f32 %v1269_v42, %v546_v56  ;;  %v242_v56 = vmul.f32 0.0, %v1257_v25 }
 0x142   :  { %v605_v9 = vadd.f32 %v1271_v44, %v192_v53 }
 0x144   :  { %v1273_v50 = vpop.permute.xlu0 %599 }
 0x145   :  { %v1275_v55 = vpop.permute.xlu1 %149  ;;  %v607_v14 = vadd.f32 %v1273_v50, %v592_v8 }
 0x146   :  { %v159_v17 = vadd.f32 %v1275_v55, %v134_v12  ;;  %v559_v12 = vsel %vm151_vm1, %v1261_v16, %v1267_v41  ;;  %v560_v16 = vsel %vm151_vm1, %v1267_v41, %v1269_v42 }
 0x148   :  { %v1279_v58 = vpop.permute.xlu0 %147 }
 0x149   :  { %v1282_v60 = vpop.permute.xlu1 %578  ;;  %v152_v41 = vsel %vm151_vm1, %v1259_v27, %v1279_v58  ;;  %v153_v42 = vsel %vm151_vm1, %v1279_v58, %v1275_v55  ;;  %v629_v55 = vmul.f32 %v1153_v21, %v1257_v25 }
 0x14a   :  { %v583_v61 = vsel %vm179_vm0, %v1282_v60, %v581_v33 }
 0x14b   :  { %v589_v62 = vadd.f32 %v583_v61, %v566_v59 }
 0x14c   :  { %v1286_v63 = vpop.permute.xlu0 %576 }
 0x14d   :  { %v1288_v0 = vpop.permute.xlu1 %637  ;;  %678 = vrot.lane.b32.xlu0 %v589_v62, %s998_s5 }
 0x14e   :  { %v648_v62 = vadd.f32 %v1288_v0, %v242_v56 }
 0x150   :  { %v1293_v1 = vpop.permute.xlu0 %639 }
 0x151   :  { %v644_v3 = vsel %vm151_vm1, %v1293_v1, %v642_v32  ;;  %v1297_v4 = vpop.permute.xlu1 %205  ;;  %v643_v27 = vsel %vm151_vm1, %v1288_v0, %v1293_v1 }
 0x152   :  { %v1299_v5 = vadd.f32 %v644_v3, %v630_v37 }
 0x154   :  { %v1301_v6 = vpop.permute.xlu0 %203 }
 0x155   :  { %v617_v7 = vpop.permute.xlu1 %616  ;;  %v211_v8 = vadd.f32 %v1301_v6, %v192_v53  ;;  %v207_v0 = vsel %vm151_vm1, %v1301_v6, %v1297_v4 }
 0x156   :  { %v621_v13 = vsel %vm179_vm0, %v617_v7, %v619_v34 }
 0x157   :  { %v627_v32 = vadd.f32 %v621_v13, %v607_v14 }
 0x158   :  { %v615_v10 = vpop.permute.xlu0 %614 }
 0x159   :  { %v625_v11 = vadd.f32 %v615_v10, %v605_v9  ;;  %v174_v54 = vpop.permute.xlu1 %173 }
 0x15b   :  { %689 = vrot.lane.b32.xlu1 %v625_v11, %s999_s6 }
 0x15c   :  { %v176_v18 = vpop.permute.xlu0 %175 }
 0x15d   :  { %v181_v33 = vsel %vm179_vm0, %v176_v18, %v178_v35  ;;  %v258_v49 = vpop.permute.xlu1 %257 }
 0x15e   :  { %v187_v59 = vadd.f32 %v181_v33, %v159_v17  ;;  %v262_v34 = vsel %vm151_vm1, %v258_v49, %v260_v38  ;;  %v132_v17 = vmul.f32 0.0, %v1255_v24 }
 0x15f   :  { %v1318_v61 = vadd.f32 %v262_v34, %v244_v46  ;;  %693 = vrot.lane.b32.xlu1 %v627_v32, %s999_s6  ;;  %v213_v46 = vadd.f32 %v1297_v4, %v1176_v51  ;;  %v620_v51 = vsel %vm179_vm0, %v615_v10, %v617_v7 }
 0x160   :  { %300 = vrot.lane.b32.xlu0 %v187_v59, %s998_s5  ;;  %v256_v37 = vpop.permute.xlu0 %255  ;;  %v564_v53 = vadd.f32 %v559_v12, %v132_v17 }
 0x161   :  { %v658_v3 = vpop.permute.xlu1 %657  ;;  %v266_v11 = vadd.f32 %v256_v37, %v242_v56  ;;  %v601_v56 = vsel %vm151_vm1, %v1271_v44, %v1273_v50  ;;  %v582_v44 = vsel %vm179_vm0, %v1286_v63, %v1282_v60  ;;  %v180_v60 = vsel %vm179_vm0, %v174_v54, %v176_v18 }
 0x162   :  { %v668_v35 = vadd.f32 %v658_v3, %v648_v62  ;;  %v587_v34 = vadd.f32 %v1286_v63, %v564_v53  ;;  %v606_v62 = vadd.f32 %v601_v56, %v1171_v36  ;;  %v133_v36 = vmul.f32 %v1255_v24, %v1160_v47 }
 0x164   :  { %704 = vrot.lane.b32.xlu1 %v668_v35, %s1000_s7  ;;  %v660_v48 = vpop.permute.xlu0 %659  ;;  %v626_v7 = vadd.f32 %v620_v51, %v606_v62  ;;  %v157_v35 = vadd.f32 %v152_v41, %v132_v17  ;;  %v158_v63 = vadd.f32 %v153_v42, %v133_v36 }
 0x165   :  { %v227_v9 = vpop.permute.xlu1 %226  ;;  %v664_v18 = vsel %vm179_vm0, %v660_v48, %v1263_v39 }
 0x166   :  { %v231_v32 = vsel %vm179_vm0, %v227_v9, %v1265_v40  ;;  %v545_v40 = vmul.f32 %v1153_v21, %v1255_v24  ;;  %v185_v58 = vadd.f32 %v174_v54, %v157_v35  ;;  %v663_v24 = vsel %vm179_vm0, %v658_v3, %v660_v48 }
 0x167   :  { %v237_v59 = vadd.f32 %v231_v32, %v213_v46  ;;  %v243_v21 = vmul.f32 %v1257_v25, %v1160_v47  ;;  %v670_v54 = vadd.f32 %v664_v18, %v1299_v5  ;;  %v1001_v25 = vmov 21  }
 0x168   :  { %v225_v38 = vpop.permute.xlu0 %224  ;;  %v565_v50 = vadd.f32 %v560_v16, %v545_v40  ;;  %v1003_v5 = vmov 23  }
 0x169   :  { %v235_v13 = vadd.f32 %v225_v38, %v211_v8  ;;  %v280_v14 = vpop.permute.xlu1 %279  ;;  %v186_v8 = vadd.f32 %v180_v60, %v158_v63  ;;  %v230_v48 = vsel %vm179_vm0, %v225_v38, %v227_v9  ;;  %v1004_v9 = vmov 20  }
 0x16a   :  { %v290_v33 = vadd.f32 %v280_v14, %v266_v11  ;;  %v588_v10 = vadd.f32 %v582_v44, %v565_v50  ;;  %v649_v11 = vadd.f32 %v643_v27, %v629_v55 }
 0x16b   :  { %312 = vrot.lane.b32.xlu0 %v235_v13, %s999_s6  ;;  %v261_v13 = vsel %vm151_vm1, %v256_v37, %v258_v49  ;;  %v212_v49 = vadd.f32 %v207_v0, %v1180_v52  ;;  %v1002_v52 = vmov 19  }
 0x16c   :  { %328 = vrot.lane.b32.xlu1 %v290_v33, %s1000_s7  ;;  %v282_v12 = vpop.permute.xlu0 %281  ;;  %v669_v1 = vadd.f32 %v663_v24, %v649_v11  ;;  %v267_v39 = vadd.f32 %v261_v13, %v243_v21 }
 0x16d   :  { %v285_v3 = vsel %vm179_vm0, %v280_v14, %v282_v12  ;;  %v284_v37 = vpop.permute.xlu1 %283  ;;  %v236_v4 = vadd.f32 %v230_v48, %v212_v49 }
 0x16e   :  { %v291_v17 = vadd.f32 %v285_v3, %v267_v39  ;;  %v286_v6 = vsel %vm179_vm0, %v282_v12, %v284_v37 }
 0x16f   :  { %316 = vrot.lane.b32.xlu0 %v237_v59, %s999_s6  ;;  %v292_v47 = vadd.f32 %v286_v6, %v1318_v61  ;;  %v1005_v61 = vmov 22  }
 0x170   :  { %674 = vrot.lane.b32.xlu1 %v587_v34, %s998_s5  ;;  %v38_v34 = vand.u32 127, %v37_v15 }
 0x172   :  { %v39_v44 = vadd.s32 128, %v38_v34 }
 0x173   :  { %691 = vrot.lane.b32.xlu0 %v626_v7, %s999_s6 }
 0x174   :  { %676 = vrot.lane.b32.xlu1 %v588_v10, %s998_s5  ;;  %v41_v41 = vand.u32 15, %v39_v44 }
 0x176   :  { %vm1408_vm4 = vcmp.ne.s32.totalorder %v41_v41, 0  ;;  %vm1421_vm8 = vcmp.ne.s32.totalorder %v41_v41, 15 }
 0x177   :  { %296 = vrot.lane.b32.xlu0 %v185_v58, %s998_s5 }
 0x178   :  { %298 = vrot.lane.b32.xlu1 %v186_v8, %s998_s5 }
 0x17b   :  { %706 = vrot.lane.b32.xlu0 %v669_v1, %s1000_s7 }
 0x17c   :  { %708 = vrot.lane.b32.xlu1 %v670_v54, %s1000_s7 }
 0x17d   :  { %v1398_v14 = vpop.permute.xlu0 %344 }
 0x17e   :  { %v1396_v38 = vpop.permute.xlu1 %366 }
 0x17f   :  { %330 = vrot.lane.b32.xlu0 %v291_v17, %s1000_s7 }
 0x180   :  { %314 = vrot.lane.b32.xlu1 %v236_v4, %s999_s6 }
 0x182   :  { %v1400_v33 = vpop.permute.xlu0 %352 }
 0x183   :  { %398 = vperm.xlu0 %896, %v1046_v2  }
 0x184   :  { %332 = vrot.lane.b32.xlu1 %v292_v47, %s1000_s7 }
 0x187   :  { %899 = vset.pattern.permute.xlu0 %v1001_v25 }
 0x188   :  { %382 = vperm.xlu1 %895, %v1046_v2   ;;  %446 = vperm.xlu0 %899, %v1046_v2  }
 0x18c   :  { %897 = vset.pattern.permute.xlu1 %v1002_v52  ;;  %902 = vset.pattern.permute.xlu0 %v1003_v5 }
 0x18d   :  { %414 = vperm.xlu1 %897, %v1046_v2  }
 0x191   :  { %898 = vset.pattern.permute.xlu1 %v1004_v9 }
 0x192   :  { %430 = vperm.xlu1 %898, %v1046_v2  }
 0x196   :  { %900 = vset.pattern.permute.xlu1 %v1005_v61 }
 0x197   :  { %462 = vperm.xlu1 %900, %v1046_v2  }
 0x19b   :  { %901 = vset.pattern.permute.xlu1 %v1003_v5 }
 0x19c   :  { %480 = vperm.xlu1 %901, %v1046_v2   ;;  %v40_v2 = vand.u32 15, %v38_v34 }
 0x19e   :  { %vm1403_vm3 = vcmp.ne.s32.totalorder %v40_v2, 0  ;;  %vm1415_vm7 = vcmp.ne.s32.totalorder %v40_v2, 15 }
 0x1bf   :  { %v679_v53 = vpop.permute.xlu0 %678 }
 0x1cd   :  { %v690_v32 = vpop.permute.xlu1 %689 }
 0x1d1   :  { %v694_v46 = vpop.permute.xlu1 %693 }
 0x1d2   :  { %v301_v56 = vpop.permute.xlu0 %300 }
 0x1d6   :  { %v705_v16 = vpop.permute.xlu1 %704 }
 0x1dd   :  { %v313_v59 = vpop.permute.xlu0 %312 }
 0x1de   :  { %v329_v40 = vpop.permute.xlu1 %328 }
 0x1e1   :  { %v317_v51 = vpop.permute.xlu0 %316 }
 0x1e2   :  { %v675_v62 = vpop.permute.xlu1 %674 }
 0x1e5   :  { %v692_v50 = vpop.permute.xlu0 %691 }
 0x1e6   :  { %v677_v42 = vpop.permute.xlu1 %676  ;;  %v695_v24 = vsel %vm318_vm5, %v690_v32, %v692_v50  ;;  %v696_v12 = vsel %vm318_vm5, %v692_v50, %v694_v46 }
 0x1e7   :  { %v680_v36 = vsel %vm302_vm2, %v675_v62, %v677_v42  ;;  %v681_v15 = vsel %vm302_vm2, %v677_v42, %v679_v53 }
 0x1e8   :  { %v684_v63 = vsel %vm1403_vm3, %v680_v36, 0.0  ;;  %v685_v55 = vsel %vm1408_vm4, %v681_v15, 0.0 }
 0x1e9   :  { %v297_v10 = vpop.permute.xlu0 %296  ;;  %v699_v13 = vadd.f32 %v695_v24, %v684_v63  ;;  %v700_v1 = vadd.f32 %v696_v12, %v685_v55 }
 0x1ea   :  { %v299_v60 = vpop.permute.xlu1 %298 }
 0x1eb   :  { %v303_v54 = vsel %vm302_vm2, %v297_v10, %v299_v60  ;;  %v304_v4 = vsel %vm302_vm2, %v299_v60, %v301_v56 }
 0x1ec   :  { %v307_v6 = vsel %vm1403_vm3, %v303_v54, 0.0  ;;  %v308_v61 = vsel %vm1408_vm4, %v304_v4, 0.0 }
 0x1ed   :  { %v707_v58 = vpop.permute.xlu0 %706 }
 0x1ee   :  { %v710_v11 = vsel %vm334_vm6, %v705_v16, %v707_v58  ;;  %v709_v18 = vpop.permute.xlu1 %708 }
 0x1ef   :  { %v714_v0 = vsel %vm1415_vm7, %v710_v11, 0.0  ;;  %v711_v21 = vsel %vm334_vm6, %v707_v58, %v709_v18 }
 0x1f0   :  { %v715_v3 = vsel %vm1421_vm8, %v711_v21, 0.0  ;;  %v716_v39 = vadd.f32 %v714_v0, %v699_v13 }
 0x1f1   :  { %v331_v48 = vpop.permute.xlu0 %330  ;;  %v717_v49 = vadd.f32 %v715_v3, %v700_v1 }
 0x1f2   :  { %v335_v37 = vsel %vm334_vm6, %v329_v40, %v331_v48  ;;  %v315_v17 = vpop.permute.xlu1 %314  ;;  %v718_v5 = vadd.f32 %v716_v39, %v1398_v14 }
 0x1f3   :  { %v319_v47 = vsel %vm318_vm5, %v313_v59, %v315_v17  ;;  %v320_v25 = vsel %vm318_vm5, %v315_v17, %v317_v51  ;;  %v339_v9 = vsel %vm1415_vm7, %v335_v37, 0.0  ;;  %v719_v32 = vadd.f32 %v717_v49, %v1398_v14 }
 0x1f4   :  { %v323_v52 = vadd.f32 %v319_v47, %v307_v6  ;;  %v324_v56 = vadd.f32 %v320_v25, %v308_v61  ;;  %v1450_v34 = vmax.f32 %v718_v5, 0.0 }
 0x1f5   :  { %v1452_v62 = vmax.f32 %v719_v32, 0.0 }
 0x1f6   :  { %v341_v46 = vadd.f32 %v339_v9, %v323_v52  ;;  %v333_v53 = vpop.permute.xlu1 %332  ;;  %v725_v41 = vrot.slane %v1450_v34, %v1071_v23  ;;  %v735_v42 = vrot.slane %v1450_v34, %v1075_v26  ;;  %v759_v11 = vrot.slane %v1450_v34, %v1118_v57 }
 0x1f7   :  { %v336_v16 = vsel %vm334_vm6, %v331_v48, %v333_v53  ;;  %v729_v7 = vrot.slane %v1452_v62, %v1071_v23  ;;  %v739_v36 = vrot.slane %v1452_v62, %v1075_v26  ;;  %v747_v12 = vrot.slane %v1450_v34, %v1104_v43 }
 0x1f8   :  { %v347_v59 = vadd.f32 %v1398_v14, %v341_v46  ;;  %v340_v40 = vsel %vm1421_vm8, %v336_v16, 0.0  ;;  %v730_v60 = vmul.f32 %v725_v41, %v1400_v33  ;;  %v740_v63 = vmul.f32 %v735_v42, %v1396_v38 }
 0x1f9   :  { %v342_v51 = vadd.f32 %v340_v40, %v324_v56  ;;  %v731_v27 = vmul.f32 %v729_v7, %v1400_v33  ;;  %v741_v55 = vmul.f32 %v739_v36, %v1396_v38  ;;  %v771_v46 = vrot.slane %v1450_v34, %v1063_v19 }
 0x1fa   :  { %v1454_v44 = vmax.f32 %v347_v59, 0.0  ;;  %v742_v18 = vadd.f32 %v740_v63, %v730_v60  ;;  %v775_v53 = vrot.slane %v1452_v62, %v1063_v19  ;;  %v783_v63 = vrot.slane %v1450_v34, %v1065_v20 }
 0x1fb   :  { %v348_v50 = vadd.f32 %v1398_v14, %v342_v51  ;;  %v743_v21 = vadd.f32 %v741_v55, %v731_v27  ;;  %v787_v27 = vrot.slane %v1452_v62, %v1065_v20 }
 0x1fc   :  { %v358_v10 = vrot.slane %v1454_v44, %v1071_v23  ;;  %v372_v35 = vrot.slane %v1454_v44, %v1075_v26  ;;  %v388_v0 = vrot.slane %v1454_v44, %v1104_v43  ;;  %v404_v1 = vrot.slane %v1454_v44, %v1118_v57 }
 0x1fd   :  { %v1457_v2 = vmax.f32 %v348_v50, 0.0  ;;  %v420_v32 = vrot.slane %v1454_v44, %v1063_v19  ;;  %v452_v36 = vrot.slane %v1454_v44, %v1083_v30 }
 0x1fe   :  { %v363_v58 = vmul.f32 %v358_v10, %v1400_v33  ;;  %v795_v10 = vrot.slane %v1450_v34, %v1083_v30 }
 0x1ff   :  { %v362_v14 = vrot.slane %v1457_v2, %v1071_v23  ;;  %v376_v15 = vrot.slane %v1457_v2, %v1075_v26  ;;  %v377_v23 = vmul.f32 %v372_v35, %v1396_v38  ;;  %v763_v26 = vrot.slane %v1452_v62, %v1118_v57 }
 0x200   :  { %v408_v54 = vrot.slane %v1457_v2, %v1118_v57  ;;  %v424_v57 = vrot.slane %v1457_v2, %v1063_v19  ;;  %v436_v19 = vrot.slane %v1454_v44, %v1065_v20  ;;  %v456_v35 = vrot.slane %v1457_v2, %v1083_v30 }
 0x201   :  { %v364_v8 = vmul.f32 %v362_v14, %v1400_v33  ;;  %v378_v24 = vmul.f32 %v376_v15, %v1396_v38  ;;  %v392_v33 = vrot.slane %v1457_v2, %v1104_v43  ;;  %v751_v38 = vrot.slane %v1452_v62, %v1104_v43 }
 0x202   :  { %v399_v13 = vpop.permute.xlu0 %398  ;;  %v379_v39 = vadd.f32 %v377_v23, %v363_v58  ;;  %v799_v14 = vrot.slane %v1452_v62, %v1083_v30  ;;  %v440_v60 = vrot.slane %v1457_v2, %v1065_v20  ;;  %v468_v20 = vrot.slane %v1454_v44, %v1108_v45 }
 0x203   :  { %v380_v48 = vadd.f32 %v378_v24, %v364_v8  ;;  %v409_v6 = vmul.f32 %v404_v1, %v399_v13  ;;  %v410_v47 = vmul.f32 %v408_v54, %v399_v13  ;;  %v764_v25 = vmul.f32 %v759_v11, %v399_v13 }
 0x204   :  { %v765_v52 = vmul.f32 %v763_v26, %v399_v13 }
 0x207   :  { %v383_v3 = vpop.permute.xlu1 %382  ;;  %v447_v15 = vpop.permute.xlu0 %446 }
 0x208   :  { %v393_v49 = vmul.f32 %v388_v0, %v383_v3  ;;  %v394_v37 = vmul.f32 %v392_v33, %v383_v3  ;;  %v752_v17 = vmul.f32 %v747_v12, %v383_v3  ;;  %v753_v4 = vmul.f32 %v751_v38, %v383_v3 }
 0x209   :  { %v457_v30 = vmul.f32 %v452_v36, %v447_v15  ;;  %v458_v13 = vmul.f32 %v456_v35, %v447_v15  ;;  %v800_v0 = vmul.f32 %v795_v10, %v447_v15  ;;  %v801_v33 = vmul.f32 %v799_v14, %v447_v15 }
 0x20a   :  { %v395_v5 = vadd.f32 %v393_v49, %v379_v39  ;;  %v396_v9 = vadd.f32 %v394_v37, %v380_v48  ;;  %v754_v43 = vadd.f32 %v752_v17, %v742_v18  ;;  %v755_v61 = vadd.f32 %v753_v4, %v743_v21 }
 0x20b   :  { %v472_v3 = vrot.slane %v1457_v2, %v1108_v45  ;;  %v807_v39 = vrot.slane %v1450_v34, %v1108_v45  ;;  %v811_v48 = vrot.slane %v1452_v62, %v1108_v45 }
 0x20c   :  { %v415_v56 = vpop.permute.xlu1 %414  ;;  %v411_v16 = vadd.f32 %v409_v6, %v395_v5  ;;  %v412_v59 = vadd.f32 %v410_v47, %v396_v9  ;;  %v766_v40 = vadd.f32 %v764_v25, %v754_v43  ;;  %v767_v51 = vadd.f32 %v765_v52, %v755_v61 }
 0x20d   :  { %v425_v50 = vmul.f32 %v420_v32, %v415_v56  ;;  %v426_v41 = vmul.f32 %v424_v57, %v415_v56  ;;  %v776_v42 = vmul.f32 %v771_v46, %v415_v56  ;;  %v777_v7 = vmul.f32 %v775_v53, %v415_v56 }
 0x20f   :  { %v427_v55 = vadd.f32 %v425_v50, %v411_v16  ;;  %v428_v58 = vadd.f32 %v426_v41, %v412_v59  ;;  %v778_v8 = vadd.f32 %v776_v42, %v766_v40  ;;  %v779_v23 = vadd.f32 %v777_v7, %v767_v51 }
 0x211   :  { %v431_v24 = vpop.permute.xlu1 %430 }
 0x212   :  { %v441_v11 = vmul.f32 %v436_v19, %v431_v24  ;;  %v442_v26 = vmul.f32 %v440_v60, %v431_v24  ;;  %v788_v18 = vmul.f32 %v783_v63, %v431_v24  ;;  %v789_v12 = vmul.f32 %v787_v27, %v431_v24 }
 0x214   :  { %v443_v21 = vadd.f32 %v441_v11, %v427_v55  ;;  %v444_v38 = vadd.f32 %v442_v26, %v428_v58  ;;  %v790_v1 = vadd.f32 %v788_v18, %v778_v8  ;;  %v791_v54 = vadd.f32 %v789_v12, %v779_v23 }
 0x216   :  { %v463_v49 = vpop.permute.xlu1 %462  ;;  %v802_v37 = vadd.f32 %v800_v0, %v790_v1  ;;  %v803_v17 = vadd.f32 %v801_v33, %v791_v54  ;;  %v459_v4 = vadd.f32 %v457_v30, %v443_v21  ;;  %v460_v6 = vadd.f32 %v458_v13, %v444_v38 }
 0x217   :  { %v473_v47 = vmul.f32 %v468_v20, %v463_v49  ;;  %v474_v25 = vmul.f32 %v472_v3, %v463_v49  ;;  %v812_v52 = vmul.f32 %v807_v39, %v463_v49  ;;  %v813_v5 = vmul.f32 %v811_v48, %v463_v49 }
 0x219   :  { %v814_v9 = vadd.f32 %v812_v52, %v802_v37  ;;  %v815_v44 = vadd.f32 %v813_v5, %v803_v17  ;;  %v475_v43 = vadd.f32 %v473_v47, %v459_v4  ;;  %v476_v61 = vadd.f32 %v474_v25, %v460_v6 }
 0x21b   :  { %v481_v2 = vpop.permute.xlu1 %480  ;;  %v477_v32 = vadd.f32 %v475_v43, %v1079_v28  ;;  %v478_v34 = vadd.f32 %v476_v61, %v1081_v29  ;;  %v818_v57 = vrot.slane %v814_v9, 4  ;;  %v819_v45 = vrot.slane %v815_v44, 4 }
 0x21c   :  { %v824_v62 = vrot.slane %v481_v2, 4 }
 0x21d   :  { %v483_v46 = vadd.f32 %v481_v2, %v477_v32  ;;  %v484_v53 = vadd.f32 %v481_v2, %v478_v34  ;;  %v822_v56 = vadd.f32 %v818_v57, %v1069_v22  ;;  %v823_v16 = vadd.f32 %v819_v45, %v1085_v31 }
 0x21f   :  { %485 = vst [vmem:[#allocation8] sm:$0xf] %v483_v46  ;;  %486 = vst [vmem:[#allocation8 + $0x8] sm:$0xf] %v484_v53  ;;  %v826_v59 = vadd.f32 %v824_v62, %v822_v56  ;;  %v827_v40 = vadd.f32 %v824_v62, %v823_v16 }
 0x221   :  { %828 = vst [vmem:[#allocation8] sm:$0xf0] %v826_v59  ;;  %829 = vst [vmem:[#allocation8 + $0x8] sm:$0xf0] %v827_v40 }
 0x222   :  { %958 = shalt.err (!%p955_p6)
}
 0x223   :  { %s959_s13 = scalar_lea.hbm %s1549_s2, 256 }
 0x224   :  { %p960_p7 = scmp.ne.s32.totalorder %s1549_s2, %s959_s13  ;;  %p963_p8 = scmp.lt.u32.totalorder %s959_s13, %s1549_s2 }
 0x226   :  { %p965_p9 = pnand %p963_p8, %p960_p7 }
 0x228   :  { %968 = shalt.err (!%p965_p9)
}
 0x229   :  { %839 = dma.vmem_to_hbm [thread:$0]  %s837_s9, 256, %s1549_s2, [#allocation5]  }
 0x22a   :  { %973 = dma.done.wait [#allocation5], 256  }
 0x22b   :  { %974 = vsyncadd [#allocation5], 4294967040 }
 0x22c   :  { %843 = vsyncpa [#allocation4], 1 }
 0x22d   :  { %844 = vsyncpa [#allocation7], 1 }
 0x22e   :  { %845 = vsyncpa [#allocation5], 1 }

</bundles_post_ra>
